<compile_context>
chip_gen: v5e
topology: v5e:2x2
jax: 0.10.0
libtpu: 0.0.40
codegen_flags: <defaults>
</compile_context>

<pallas_src>
import functools

import jax
import jax.numpy as jnp
from jax import lax
from jax.experimental import pallas as pl
from jax.experimental.pallas import tpu as pltpu


def _round_up(x, m):
    return ((x + m - 1) // m) * m


def _predictor_kernel(x_ref, w_ref, mask_ref, o_ref, *, mask_before_dot):
    # x_ref:    (tm, D)   row-tile of flattened data
    # w_ref:    (tn, D)   column-tile of weight, PyTorch [num_types, dim] layout
    # mask_ref: (tm, 1)   row-tile of non_pad_mask
    # o_ref:    (tm, tn)  output tile (lane-dense: tn is a multiple of 128)
    x = x_ref[...]
    mask = mask_ref[...]
    if mask_before_dot:
        x = x * mask  # tm*D VPU ops (cheaper side when D <= tn)
    out = lax.dot_general(
        x,
        w_ref[...],
        dimension_numbers=(((1,), (1,)), ((), ())),  # contract dim 1 of both
        preferred_element_type=jnp.float32,
    )
    if not mask_before_dot:
        out = out * mask  # broadcast over the type axis
    o_ref[...] = out.astype(o_ref.dtype)


def predictor_forward(data, weight, non_pad_mask, *, tm=512, tn=512):
    """data: [B, S, D], weight: [num_types, D], non_pad_mask: [B, S, 1]."""
    B, S, D = data.shape
    N = weight.shape[0]
    M = B * S

    # --- tiling geometry ---------------------------------------------------
    # Rows: large tile, multiple of 8, never larger than the (rounded) problem;
    # pad M up to a multiple of tm instead of asserting divisibility.
    tm = _round_up(max(8, min(tm, _round_up(M, 8))), 8)
    M_pad = _round_up(M, tm)
    # Cols: pad num_types to a lane-dense multiple of 128, tile at <= tn
    # (multiple of 128) so the resident weight tile stays small in VMEM.
    N_pad = _round_up(N, 128)
    tn = _round_up(max(128, min(tn, N_pad)), 128)
    N_pad = _round_up(N_pad, tn)

    x = data.reshape(M, D)
    mask = non_pad_mask.reshape(M, 1).astype(data.dtype)
    if M_pad != M:
        x = jnp.pad(x, ((0, M_pad - M), (0, 0)))
        mask = jnp.pad(mask, ((0, M_pad - M), (0, 0)))
    w = weight
    if N_pad != N:
        w = jnp.pad(w, ((0, N_pad - N), (0, 0)))  # zero rows -> zero output cols

    grid = (M_pad // tm, N_pad // tn)
    kernel = functools.partial(_predictor_kernel, mask_before_dot=(D <= tn))

    cost = pl.CostEstimate(
        flops=2 * M_pad * D * N_pad,
        transcendentals=0,
        bytes_accessed=4 * (M_pad * D + N_pad * D + M_pad * N_pad + M_pad),
    )

    out_flat = pl.pallas_call(
        kernel,
        out_shape=jax.ShapeDtypeStruct((M_pad, N_pad), data.dtype),
        grid_spec=pltpu.PrefetchScalarGridSpec(
            num_scalar_prefetch=0,
            grid=grid,
            in_specs=[
                pl.BlockSpec((tm, D), lambda i, j: (i, 0)),   # data rows
                pl.BlockSpec((tn, D), lambda i, j: (j, 0)),   # weight cols (no transpose)
                pl.BlockSpec((tm, 1), lambda i, j: (i, 0)),   # mask rows
            ],
            out_specs=pl.BlockSpec((tm, tn), lambda i, j: (i, j)),
        ),
        compiler_params=pltpu.CompilerParams(
            dimension_semantics=("parallel", "parallel"),
        ),
        cost_estimate=cost,
    )(x, w, mask)

    return out_flat[:M, :N].reshape(B, S, N)


if __name__ == "__main__":
    # Small shapes consistent with the module's forward.
    B, S, D, NUM_TYPES = 2, 8, 32, 16

    key = jax.random.PRNGKey(0)
    k_data, k_w, k_mask = jax.random.split(key, 3)

    data = jax.random.normal(k_data, (B, S, D), dtype=jnp.float32)

    # Deterministic xavier_normal_ init for nn.Linear(dim, num_types, bias=False):
    # weight shape [num_types, dim], std = sqrt(2 / (fan_in + fan_out)).
    xavier_std = (2.0 / (D + NUM_TYPES)) ** 0.5
    weight = xavier_std * jax.random.normal(k_w, (NUM_TYPES, D), dtype=jnp.float32)

    # non_pad_mask: 1.0 for real tokens, 0.0 for padding, shape [B, S, 1].
    non_pad_mask = (jax.random.uniform(k_mask, (B, S, 1)) > 0.25).astype(jnp.float32)

    out = predictor_forward(data, weight, non_pad_mask)
    out = jax.block_until_ready(out)

    # Pure-JAX reference check.
    ref = (data @ weight.T) * non_pad_mask
    assert out.shape == (B, S, NUM_TYPES)
    assert jnp.allclose(out, ref, atol=1e-5, rtol=1e-5)

    print("KERNEL_OK")
</pallas_src>

<mosaic_0001>
module attributes {stable_mosaic.version = 11 : i64} {
  func.func @_predictor_kernel(%arg0: i32, %arg1: i32, %arg2: memref<16x32xf32, #tpu.memory_space<vmem>>, %arg3: memref<128x32xf32, #tpu.memory_space<vmem>>, %arg4: memref<16x1xf32, #tpu.memory_space<vmem>>, %arg5: memref<16x128xf32, #tpu.memory_space<vmem>>) attributes {dimension_semantics = [#tpu.dimension_semantics<parallel>, #tpu.dimension_semantics<parallel>], iteration_bounds = array<i64: 1, 1>, scalar_prefetch = 0 : i64, scratch_operands = 0 : i64, tpu.core_type = #tpu.core_type<tc>, window_params = [{transform_indices = @transform_0, window_bounds = array<i64: 16, 32>}, {transform_indices = @transform_1, window_bounds = array<i64: 128, 32>}, {transform_indices = @transform_2, window_bounds = array<i64: 16, 1>}, {transform_indices = @transform_3, window_bounds = array<i64: 16, 128>}]} {
    %c0 = arith.constant 0 : index
    %c0_0 = arith.constant 0 : index
    %0 = vector.load %arg2[%c0, %c0_0] : memref<16x32xf32, #tpu.memory_space<vmem>>, vector<16x32xf32>
    %c0_1 = arith.constant 0 : index
    %c0_2 = arith.constant 0 : index
    %1 = vector.load %arg4[%c0_1, %c0_2] : memref<16x1xf32, #tpu.memory_space<vmem>>, vector<16x1xf32>
    %2 = vector.broadcast %1 : vector<16x1xf32> to vector<16x32xf32>
    %3 = arith.mulf %0, %2 : vector<16x32xf32>
    %c0_3 = arith.constant 0 : index
    %c0_4 = arith.constant 0 : index
    %4 = vector.load %arg3[%c0_3, %c0_4] : memref<128x32xf32, #tpu.memory_space<vmem>>, vector<128x32xf32>
    %cst = arith.constant dense<0.000000e+00> : vector<16x128xf32>
    %5 = tpu.matmul %3, %4, %cst {dimension_numbers = #tpu.dot_dimension_numbers<[1], [1], [0], [0], [0, 0, 1, 0], [], []>} : vector<16x32xf32>, vector<128x32xf32>, vector<16x128xf32> -> vector<16x128xf32>
    %c0_5 = arith.constant 0 : index
    %c0_6 = arith.constant 0 : index
    %6 = vector.load %arg5[%c0_5, %c0_6] : memref<16x128xf32, #tpu.memory_space<vmem>>, vector<16x128xf32>
    tpu.vector_store %arg5[%c0_5, %c0_6], %5 {strides = array<i32>} : memref<16x128xf32, #tpu.memory_space<vmem>>, vector<16x128xf32>,
    return
  }
  func.func @transform_0(%arg0: i32, %arg1: i32) -> (i32, i32) {
    %c0_i32 = arith.constant 0 : i32
    %c0_i32_0 = arith.constant 0 : i32
    return %arg0, %c0_i32 : i32, i32
  }
  func.func @transform_1(%arg0: i32, %arg1: i32) -> (i32, i32) {
    %c0_i32 = arith.constant 0 : i32
    %c0_i32_0 = arith.constant 0 : i32
    return %arg1, %c0_i32 : i32, i32
  }
  func.func @transform_2(%arg0: i32, %arg1: i32) -> (i32, i32) {
    %c0_i32 = arith.constant 0 : i32
    %c0_i32_0 = arith.constant 0 : i32
    return %arg0, %c0_i32 : i32, i32
  }
  func.func @transform_3(%arg0: i32, %arg1: i32) -> (i32, i32) {
    %c0_i32 = arith.constant 0 : i32
    return %arg0, %arg1 : i32, i32
  }
}

</mosaic_0001>

<bundles_post_ra>
// kernel: tpu_custom_call.1
= control target key start
LH: loop header
LB: loop body
LE: loop exit
PB: predicated region body
PF: predicated region fallthrough
CT: control target
= control target key end

     0   :  { %vm47_vm0 = vcmask 261120   ;;  %v210_v2 = vmov 0   ;;  %s331_s0 = inlined_call_operand.vmem [shape: f32[16,32], index: 0, kind: input, shape index: {}]   ;;  %s332_s1 = inlined_call_operand.vmem [shape: f32[128,32], index: 1, kind: input, shape index: {}]   ;;  %s333_s2 = inlined_call_operand.vmem [shape: f32[16,1], index: 2, kind: input, shape index: {}]   ;;  %s334_s3 = inlined_call_operand.hbm [shape: f32[16,128], index: 3, kind: output, shape index: {}]  }
   0x1   :  { %v17_v0 = vld [vmem:[%s333_s2] sm:$0xff]  ;;  %v46_v1 = vld [vmem:[%s332_s1 + $0x78] sm:$0xff]  ;;  %183 = vset.pattern.permute.xlu0 %v210_v2  ;;  %v45_v3 = vld [vmem:[%s332_s1 + $0x70] sm:$0xff] }
   0x2   :  { %145 = vmatpush.xpose.msk.msra.mxu0 %vm47_vm0, %v46_v1  ;;  %21 = vperm.xlu0 %183, %v17_v0  }
   0x3   :  { %163 = vmatpush.xpose.msk.msra.mxu1 %vm47_vm0, %v46_v1 }
   0x4   :  { %8 = vsyncpa [#allocation3], 0  ;;  %v44_v4 = vld [vmem:[%s332_s1 + $0x68] sm:$0xff]  ;;  %v43_v6 = vld [vmem:[%s332_s1 + $0x60] sm:$0xff]  ;;  %s133_s26 = sshll.u32 %s334_s3, 4  ;;  %s212_s27 = smov 128   ;;  %s134_s26 = int_to_ptr.hbm [resolvable:$true] %s133_s26 }
   0x5   :  { %v18_v5 = vld [vmem:[%s333_s2 + $0x8] sm:$0xff]  ;;  %v42_v7 = vld [vmem:[%s332_s1 + $0x58] sm:$0xff]  ;;  %v41_v8 = vld [vmem:[%s332_s1 + $0x50] sm:$0xff]  ;;  %s213_s28 = smov 8  }
   0x6   :  { %146 = vmatpush.xpose.msk.msra.mxu0 %vm47_vm0, %v45_v3  ;;  %v40_v9 = vld [vmem:[%s332_s1 + $0x48] sm:$0xff]  ;;  %v39_v10 = vld [vmem:[%s332_s1 + $0x40] sm:$0xff]  ;;  %v38_v11 = vld [vmem:[%s332_s1 + $0x38] sm:$0xff] }
   0x7   :  { %164 = vmatpush.xpose.msk.msra.mxu1 %vm47_vm0, %v45_v3  ;;  %v37_v12 = vld [vmem:[%s332_s1 + $0x30] sm:$0xff]  ;;  %v36_v13 = vld [vmem:[%s332_s1 + $0x28] sm:$0xff]  ;;  %v35_v14 = vld [vmem:[%s332_s1 + $0x20] sm:$0xff] }
   0x8   :  { %v34_v15 = vld [vmem:[%s332_s1 + $0x18] sm:$0xff]  ;;  %v33_v16 = vld [vmem:[%s332_s1 + $0x10] sm:$0xff]  ;;  %v32_v17 = vld [vmem:[%s332_s1 + $0x8] sm:$0xff] }
   0x9   :  { %v31_v18 = vld [vmem:[%s332_s1] sm:$0xff]  ;;  %v16_v22 = vld [vmem:[%s331_s0 + $0x8] sm:$0xff]  ;;  %s211_s1 = smov [#allocation2]  }
   0xa   :  { %147 = vmatpush.xpose.msk.msra.mxu0 %vm47_vm0, %v44_v4  ;;  %26 = vperm.xlu0 %183, %v18_v5   ;;  %v15_v19 = vld [vmem:[%s331_s0] sm:$0xff]  ;;  %s131_s24 = sshll.u32 %s211_s1, 4  ;;  %s132_s24 = int_to_ptr.vmem [resolvable:$true] %s131_s24 }
   0xb   :  { %165 = vmatpush.xpose.msk.msra.mxu1 %vm47_vm0, %v44_v4 }
   0xe   :  { %148 = vmatpush.xpose.msk.msra.mxu0 %vm47_vm0, %v43_v6 }
   0xf   :  { %166 = vmatpush.xpose.msk.msra.mxu1 %vm47_vm0, %v43_v6 }
  0x12   :  { %149 = vmatpush.xpose.msk.msra.mxu0 %vm47_vm0, %v42_v7 }
  0x13   :  { %167 = vmatpush.xpose.msk.msra.mxu1 %vm47_vm0, %v42_v7 }
  0x16   :  { %150 = vmatpush.xpose.msk.msra.mxu0 %vm47_vm0, %v41_v8 }
  0x17   :  { %168 = vmatpush.xpose.msk.msra.mxu1 %vm47_vm0, %v41_v8 }
  0x1a   :  { %151 = vmatpush.xpose.msk.msra.mxu0 %vm47_vm0, %v40_v9 }
  0x1b   :  { %169 = vmatpush.xpose.msk.msra.mxu1 %vm47_vm0, %v40_v9 }
  0x1e   :  { %152 = vmatpush.xpose.msk.msra.mxu0 %vm47_vm0, %v39_v10 }
  0x1f   :  { %170 = vmatpush.xpose.msk.msra.mxu1 %vm47_vm0, %v39_v10 }
  0x22   :  { %153 = vmatpush.xpose.msk.msra.mxu0 %vm47_vm0, %v38_v11 }
  0x23   :  { %171 = vmatpush.xpose.msk.msra.mxu1 %vm47_vm0, %v38_v11 }
  0x26   :  { %154 = vmatpush.xpose.msk.msra.mxu0 %vm47_vm0, %v37_v12 }
  0x27   :  { %172 = vmatpush.xpose.msk.msra.mxu1 %vm47_vm0, %v37_v12 }
  0x2a   :  { %155 = vmatpush.xpose.msk.msra.mxu0 %vm47_vm0, %v36_v13 }
  0x2b   :  { %173 = vmatpush.xpose.msk.msra.mxu1 %vm47_vm0, %v36_v13 }
  0x2e   :  { %156 = vmatpush.xpose.msk.msra.mxu0 %vm47_vm0, %v35_v14 }
  0x2f   :  { %174 = vmatpush.xpose.msk.msra.mxu1 %vm47_vm0, %v35_v14 }
  0x32   :  { %157 = vmatpush.xpose.msk.msra.mxu0 %vm47_vm0, %v34_v15 }
  0x33   :  { %175 = vmatpush.xpose.msk.msra.mxu1 %vm47_vm0, %v34_v15 }
  0x36   :  { %158 = vmatpush.xpose.msk.msra.mxu0 %vm47_vm0, %v33_v16 }
  0x37   :  { %176 = vmatpush.xpose.msk.msra.mxu1 %vm47_vm0, %v33_v16 }
  0x3a   :  { %159 = vmatpush.xpose.msk.msra.mxu0 %vm47_vm0, %v32_v17 }
  0x3b   :  { %177 = vmatpush.xpose.msk.msra.mxu1 %vm47_vm0, %v32_v17 }
  0x3e   :  { %160 = vmatpush.xpose.msk.msra.mxu0 %vm47_vm0, %v31_v18 }
  0x3f   :  { %178 = vmatpush.xpose.msk.msra.mxu1 %vm47_vm0, %v31_v18 }
  0x74   :  { %v22_v20 = vpop.permute.xlu0 %21 }
  0x75   :  { %v29_v21 = vmul.f32 %v22_v20, %v15_v19 }
  0x77   :  { %161 = vmatmul.msk.f32.vlgmr.msra.gmra.mxu0 %vm47_vm0, %v29_v21 }
  0x7c   :  { %v27_v23 = vpop.permute.xlu0 %26 }
  0x7d   :  { %v30_v24 = vmul.f32 %v27_v23, %v16_v22 }
  0x7f   :  { %162 = vmatmul.msk.f32.vlgmr.msra.gmra.mxu1 %vm47_vm0, %v30_v24 }
  0xf4   :  { %v119_v25 = vpop.f32.mrf.mxu0 }
  0xf5   :  { %125 = vst [vmem:[#allocation2] sm:$0xff] %v119_v25 }
  0xfc   :  { %v122_v26 = vpop.f32.mrf.mxu1 }
  0xfd   :  { %126 = vst [vmem:[#allocation2 + $0x8] sm:$0xff] %v122_v26 }
  0xfe   :  { %139 = dma.vmem_to_hbm [thread:$0]  %s132_s24, 256, %s134_s26, [#allocation3], %s212_s27, %s212_s27, %s213_s28  }
  0xff   :  { %208 = dma.done.wait [#allocation3], 256  }
 0x100   :  { %209 = vsyncadd [#allocation3], 4294967040 }
 0x101   :  { %144 = vsyncpa [#allocation3], 1 }

</bundles_post_ra>
